<compile_context>
chip_gen: v6e
topology: v6e:2x2x1
jax: 0.10.0
libtpu: 0.0.40
codegen_flags: <defaults>
</compile_context>

<pallas_src>
import jax
import jax.numpy as jnp
from jax.experimental import pallas as pl
from jax.experimental.pallas import tpu as pltpu


def conv_gemm_bias_kernel(w_ref, b_ref, p_ref, o_ref):
    # w_ref: (Cout, K)        flattened conv weights (tiny, resident every step)
    # b_ref: (Cout, 1)        bias, broadcast along lanes in the epilogue
    # p_ref: (K, TILE_M)      transposed im2col patches (K in sublanes, M in lanes)
    # o_ref: (Cout, TILE_M)   lane-dense output tile
    acc = jnp.dot(w_ref[...], p_ref[...], preferred_element_type=jnp.float32)
    o_ref[...] = (acc + b_ref[...]).astype(o_ref.dtype)


def _choose_tile_m(m):
    # Big tiles (512) once the problem is large enough to hit the HBM roofline;
    # smaller multiples of 128 at toy sizes so the grid still has >= 2 steps
    # (pipelining + v7x two-core split exercised).
    if m >= 2048:
        return 512
    if m >= 256:
        return 256
    return 128


def sjm_forward_pallas(x_nchw, w_oihw, bias):
    """Forward pass of SJM: y = Conv2d(3, 6, k=3, s=1, p=0)(x)."""
    N, Cin, H, W = x_nchw.shape
    Cout, Cin_w, KH, KW = w_oihw.shape
    assert Cin == Cin_w
    OH, OW = H - KH + 1, W - KW + 1
    K = KH * KW * Cin
    M = N * OH * OW

    # ---- glue (plain JAX): transposed im2col, K-major = (kh, kw, ci) ----
    # patches_t[(kh*KW+kw)*Cin + ci, n*OH*OW + oh*OW + ow] = x[n, ci, oh+kh, ow+kw]
    slices = []
    for kh in range(KH):
        for kw in range(KW):
            s = x_nchw[:, :, kh:kh + OH, kw:kw + OW]        # (N, Cin, OH, OW)
            slices.append(jnp.transpose(s, (1, 0, 2, 3)))   # (Cin, N, OH, OW)
    patches_t = jnp.stack(slices, axis=0).reshape(K, M)     # (K, M)

    # weights: (Cout, Cin, KH, KW) -> (Cout, KH, KW, Cin) -> (Cout, K)
    w_t = jnp.transpose(w_oihw, (0, 2, 3, 1)).reshape(Cout, K)
    b_mat = bias.reshape(Cout, 1)

    # ---- tile & pad M to a multiple of the row tile (lane-dense blocks) ----
    tile_m = _choose_tile_m(M)
    m_pad = ((M + tile_m - 1) // tile_m) * tile_m
    if m_pad != M:
        patches_t = jnp.pad(patches_t, ((0, 0), (0, m_pad - M)))

    grid = (m_pad // tile_m,)

    # ---- hot path in Pallas: row-tiled GEMM + bias epilogue ----
    out_flat_pad = pl.pallas_call(
        conv_gemm_bias_kernel,
        out_shape=jax.ShapeDtypeStruct((Cout, m_pad), x_nchw.dtype),
        grid=grid,
        in_specs=[
            pl.BlockSpec((Cout, K), lambda i: (0, 0)),       # weights (resident)
            pl.BlockSpec((Cout, 1), lambda i: (0, 0)),       # bias (resident)
            pl.BlockSpec((K, tile_m), lambda i: (0, i)),     # patches tile
        ],
        out_specs=pl.BlockSpec((Cout, tile_m), lambda i: (0, i)),
        compiler_params=pltpu.CompilerParams(
            dimension_semantics=("parallel",),               # v7x: split M over 2 TCs
        ),
    )(w_t, b_mat, patches_t)

    # ---- glue: drop padding, (Cout, M) -> (N, Cout, OH, OW) ----
    out = out_flat_pad[:, :M].reshape(Cout, N, OH, OW)
    return jnp.transpose(out, (1, 0, 2, 3))


if __name__ == "__main__":
    key = jax.random.PRNGKey(0)
    kx, kw, kb = jax.random.split(key, 3)

    # Small shapes consistent with the module: batch=2, C_in=3, 16x16 spatial.
    N, Cin, H, W = 2, 3, 16, 16
    Cout, KH, KW = 6, 3, 3

    x = jax.random.normal(kx, (N, Cin, H, W), dtype=jnp.float32)

    # Deterministic parameter init (PyTorch-like uniform(-1/sqrt(fan_in), ...)).
    fan_in = Cin * KH * KW
    bound = 1.0 / jnp.sqrt(jnp.float32(fan_in))
    w = jax.random.uniform(kw, (Cout, Cin, KH, KW), jnp.float32, -bound, bound)
    b = jax.random.uniform(kb, (Cout,), jnp.float32, -bound, bound)

    y = jax.block_until_ready(sjm_forward_pallas(x, w, b))

    # Reference check against XLA's conv (same semantics as nn.Conv2d).
    y_ref = jax.lax.conv_general_dilated(
        x, w, window_strides=(1, 1), padding="VALID",
        dimension_numbers=("NCHW", "OIHW", "NCHW"),
    ) + b.reshape(1, Cout, 1, 1)
    y_ref = jax.block_until_ready(y_ref)

    assert y.shape == (N, Cout, H - 2, W - 2)
    assert jnp.allclose(y, y_ref, atol=1e-5, rtol=1e-5)
    print("KERNEL_OK")
</pallas_src>

<mosaic_0001>
module attributes {stable_mosaic.version = 11 : i64} {
  func.func @conv_gemm_bias_kernel(%arg0: i32, %arg1: memref<6x27xf32, #tpu.memory_space<vmem>>, %arg2: memref<6x1xf32, #tpu.memory_space<vmem>>, %arg3: memref<27x256xf32, #tpu.memory_space<vmem>>, %arg4: memref<6x256xf32, #tpu.memory_space<vmem>>) attributes {dimension_semantics = [#tpu.dimension_semantics<parallel>], iteration_bounds = array<i64: 2>, scalar_prefetch = 0 : i64, scratch_operands = 0 : i64, tpu.core_type = #tpu.core_type<tc>, window_params = [{pipeline_mode = #tpu.pipeline_mode<synchronous>, transform_indices = @transform_0, window_bounds = array<i64: 6, 27>}, {pipeline_mode = #tpu.pipeline_mode<synchronous>, transform_indices = @transform_1, window_bounds = array<i64: 6, 1>}, {transform_indices = @transform_2, window_bounds = array<i64: 27, 256>}, {transform_indices = @transform_3, window_bounds = array<i64: 6, 256>}]} {
    %c0 = arith.constant 0 : index
    %c0_0 = arith.constant 0 : index
    %0 = vector.load %arg1[%c0, %c0_0] : memref<6x27xf32, #tpu.memory_space<vmem>>, vector<6x27xf32>
    %c0_1 = arith.constant 0 : index
    %c0_2 = arith.constant 0 : index
    %1 = vector.load %arg3[%c0_1, %c0_2] : memref<27x256xf32, #tpu.memory_space<vmem>>, vector<27x256xf32>
    %cst = arith.constant dense<0.000000e+00> : vector<6x256xf32>
    %2 = tpu.matmul %0, %1, %cst {dimension_numbers = #tpu.dot_dimension_numbers<[1], [0], [0], [1], [0, 0, 1, 1], [], []>} : vector<6x27xf32>, vector<27x256xf32>, vector<6x256xf32> -> vector<6x256xf32>
    %c0_3 = arith.constant 0 : index
    %c0_4 = arith.constant 0 : index
    %3 = vector.load %arg2[%c0_3, %c0_4] : memref<6x1xf32, #tpu.memory_space<vmem>>, vector<6x1xf32>
    %4 = vector.broadcast %3 : vector<6x1xf32> to vector<6x256xf32>
    %5 = arith.addf %2, %4 : vector<6x256xf32>
    %c0_5 = arith.constant 0 : index
    %c0_6 = arith.constant 0 : index
    %6 = vector.load %arg4[%c0_5, %c0_6] : memref<6x256xf32, #tpu.memory_space<vmem>>, vector<6x256xf32>
    tpu.vector_store %arg4[%c0_5, %c0_6], %5 {strides = array<i32>} : memref<6x256xf32, #tpu.memory_space<vmem>>, vector<6x256xf32>,
    return
  }
  func.func @transform_0(%arg0: i32) -> (i32, i32) {
    %c0_i32 = arith.constant 0 : i32
    %c0_i32_0 = arith.constant 0 : i32
    %c0_i32_1 = arith.constant 0 : i32
    return %c0_i32, %c0_i32_0 : i32, i32
  }
  func.func @transform_1(%arg0: i32) -> (i32, i32) {
    %c0_i32 = arith.constant 0 : i32
    %c0_i32_0 = arith.constant 0 : i32
    %c0_i32_1 = arith.constant 0 : i32
    return %c0_i32, %c0_i32_0 : i32, i32
  }
  func.func @transform_2(%arg0: i32) -> (i32, i32) {
    %c0_i32 = arith.constant 0 : i32
    %c0_i32_0 = arith.constant 0 : i32
    return %c0_i32, %arg0 : i32, i32
  }
  func.func @transform_3(%arg0: i32) -> (i32, i32) {
    %c0_i32 = arith.constant 0 : i32
    %c0_i32_0 = arith.constant 0 : i32
    return %c0_i32, %arg0 : i32, i32
  }
}

</mosaic_0001>

<bundles_post_ra>
// kernel: tpu_custom_call.1
= control target key start
LH: loop header
LB: loop body
LE: loop exit
PB: predicated region body
PF: predicated region fallthrough
CT: control target
= control target key end

     0   :  { %8 = vsyncpa [#allocation3], 0  ;;  %s716_s0 = inlined_call_operand.vmem [shape: f32[6,27], index: 0, kind: input, shape index: {}]   ;;  %s717_s1 = inlined_call_operand.vmem [shape: f32[6,1], index: 1, kind: input, shape index: {}]   ;;  %s718_s2 = inlined_call_operand.hbm [shape: f32[27,512], index: 2, kind: input, shape index: {}]   ;;  %s719_s3 = inlined_call_operand.hbm [shape: f32[6,512], index: 3, kind: output, shape index: {}]  }
   0x1   :  { %10 = vsyncpa [#allocation3 + $0x1], 0 }
   0x2   :  { %11 = vsyncpa [#allocation4], 0 }
   0x3   :  { %13 = vsyncpa [#allocation4 + $0x1], 0  ;;  %s567_s12 = smov 0   ;;  %s569_s13 = smov 0  }
   0x4   :  { %s571_s14 = smov 0   ;;  %s573_s15 = smov 0  }
   0x5 LB: > { %s588_s16 = sadd.s32 4294967295, %s538_s15   ;;  %s375_s17 = sadd.s32 4294967294, %s538_s15   ;;  %s538_s15 = sphi %s573_s15, %s735_s15   ;;  %s534_s14 = sphi %s571_s14, %s734_s14   ;;  %s530_s13 = sphi %s569_s13, %s733_s13   ;;  %s526_s12 = sphi %s567_s12, %s732_s12  }
   0x6   : > { %s592_s18 = sadd.s32 1, %s538_s15   ;;  %s68_s19 = sadd.s32 1, %s534_s14 }
   0x7   : > { %s65_s20 = ssub.s32 %s538_s15, %s592_s18  ;;  %p75_p0 = scmp.ne.s32.totalorder %s534_s14, %s530_s13 }
   0x8   : > { %p66_p1 = scmp.eq.s32.totalorder %s65_s20, 0  ;;  %p76_p2 = scmp.eq.s32.totalorder %s538_s15, 0 }
   0x9   : > { %p81_p3 = scmp.ne.s32.totalorder %s530_s13, %s526_s12  ;;  %p82_p4 = scmp.eq.s32.totalorder %s588_s16, 0 }
   0xa   : > { %s604_s21 = scalar_select %p66_p1, %s534_s14, %s68_s19  }
   0xb   : > { %p606_p5 = por %p76_p2, %p75_p0  ;;  %p610_p6 = por %p82_p4, %p81_p3 }
   0xc   : > { %p105_p7 = scmp.eq.s32.totalorder %s588_s16, 1  ;;  %p111_p8 = scmp.eq.s32.totalorder %s375_s17, 1 }
   0xd   : > { %s723_s23 = scalar_select %p610_p6, 1, 0 }
   0xe   : > { %p406_p10 = scmp.lt.s32.totalorder %s538_s15, 2  ;;  %p617_p11 = por %p105_p7, %p75_p0 }
   0xf   : > { %p621_p12 = por %p111_p8, %p81_p3  ;;  %s137_s26 = sand.u32 1, %s534_s14  }
  0x10   : > { %s724_s24 = scalar_select %p617_p11, 1, 0 }
  0x11   : > { %s725_s25 = scalar_select %p621_p12, 1, 0 }
  0x12   : > { %s392_s27 = sshll.u32 %s538_s15, 8  ;;  %s378_s28 = sshll.u32 %s137_s26, 6 }
  0x13   : > { %s630_s4 = scalar_lea.hbm %s718_s2, %s392_s27  ;;  %s141_s5 = scalar_lea.vmem [#allocation2], %s378_s28 }
  0x14   : > { %s148_s6 = sshll.u32 %s141_s5, 4  ;;  %p634_p13 = pnand %p406_p10, %p606_p5  ;;  %s638_s6 = int_to_ptr.vmem [resolvable:$true] %s148_s6 }
  0x15   : > { %s641_s8 = scalar_lea.sflag [#allocation3], %s137_s26  ;;  %s446_s9 = scalar_lea.hbm %s630_s4, 1024 }
  0x16   : > { %p447_p1 = scmp.ne.s32.totalorder %s630_s4, %s446_s9  ;;  %p448_p2 = pneg %p634_p13 }
  0x17   : > { %s451_s17 = scalar_lea.hbm %s718_s2, 2048  ;;  %p452_p5 = scmp.lt.s32.totalorder %s630_s4, %s718_s2 }
  0x18   : > { %p449_p3 = pnand %p448_p2, %p447_p1  ;;  %p453_p7 = scmp.lt.s32.totalorder %s451_s17, %s446_s9 }
  0x1a   : > { %p450_p4 = pneg %p449_p3  ;;  %p454_p8 = por %p453_p7, %p452_p5 }
  0x1c   : > { %p455_p10 = pnand %p454_p8, %p450_p4 }
  0x1e   : > { %458 = shalt.err (!%p455_p10)
}
  0x1f   : > { %s459_s22 = scalar_lea.vmem %s638_s6, 1024  ;;  %s540_s26 = smov [#allocation2]  }
  0x20   : > { %p460_p9 = scmp.ne.s32.totalorder %s638_s6, %s459_s22  ;;  %s464_s27 = sshll.u32 %s540_s26, 4  ;;  %s465_s27 = int_to_ptr.vmem [resolvable:$false] %s464_s27 }
  0x21   : > { %s466_s28 = scalar_lea.vmem %s465_s27, 2048  ;;  %p467_p3 = scmp.lt.s32.totalorder %s638_s6, %s465_s27 }
  0x22   : > { %p462_p0 = pnand %p460_p9, %p448_p2  ;;  %p468_p12 = scmp.lt.s32.totalorder %s466_s28, %s459_s22 }
  0x24   : > { %p463_p1 = pneg %p462_p0  ;;  %p469_p11 = por %p468_p12, %p467_p3 }
  0x26   : > { %p470_p6 = pnand %p469_p11, %p463_p1 }
  0x28   : > { %473 = shalt.err (!%p470_p6)
}
  0x29   : > { %s541_s29 = smov 512   ;;  %s542_s30 = smov 256  }
  0x2a   : > { %s543_s5 = smov 16   ;;  %p156_p9 = scmp.lt.s32.totalorder %s538_s15, 3 }
  0x2b   : > { %401 = dma.hbm_to_vmem [thread:$0]  (!%p634_p13), %s630_s4, 1024, %s638_s6, %s641_s8, %s541_s29, %s542_s30, %s543_s5  }
  0x2c   : > { %p727_p0 = scmp.ge.s32.totalorder %s538_s15, 1 }
  0x2e   : > { %p157_p2 = pnand %p727_p0, %p156_p9 }
  0x2f   : > { %s666_s9 = sand.u32 (!%p157_p2), 1, %s530_s13   ;;  %p728_p6 = scmp.ne.s32.totalorder (!%p157_p2), %s723_s23, 0 }
  0x30   : > { %160 = sbr.rel (%p157_p2) target bundleno = 274 (0x112), region = 32  ;;  %s382_s10 = sshll.u32 (!%p157_p2), %s666_s9, 6 }
  0x31   : > { %s163_s11 = scalar_lea.sflag (!%p157_p2), [#allocation3], %s666_s9  ;;  %s166_s17 = scalar_lea.vmem (!%p157_p2), [#allocation2], %s382_s10 }
  0x35   : > { %517 = dma.done.wait (%p728_p6), %s163_s11, 1024  }
  0x36   : > { %519 = vsyncadd (%p728_p6), %s163_s11, 4294966272  ;;  %v544_v0 = vmov 0.0   ;;  %v545_v1 = vmov 0   ;;  %vm210_vm0 = vcmask 1042432   ;;  %v199_v2 = vld [vmem:[%s166_s17 + $0x38] sm:$0x7] }
  0x37   : > { %281 = vmatprep.mubr.f32.mxu0 %v544_v0  ;;  %445 = vset.pattern.permute.xlu0 %v545_v1  ;;  %v198_v3 = vld [vmem:[%s166_s17 + $0x30] sm:$0x7]  ;;  %v197_v4 = vld [vmem:[%s166_s17 + $0x28] sm:$0xff]  ;;  %v196_v5 = vld [vmem:[%s166_s17 + $0x20] sm:$0xff]  ;;  %vm206_vm1 = vcmask 220160   ;;  %s383_s8 = sshll.u32 %s666_s9, 4 }
  0x38   : > { %384 = vmatprep.subr.msk.mxu0 %vm210_vm0, %v199_v2  ;;  %v195_v6 = vld [vmem:[%s166_s17 + $0x18] sm:$0xff]  ;;  %v194_v7 = vld [vmem:[%s166_s17 + $0x10] sm:$0xff]  ;;  %v200_v8 = vld [vmem:[%s717_s1] sm:$0x3f]  ;;  %s393_s19 = sshll.u32 %s588_s16, 8  ;;  %s188_s20 = scalar_lea.vmem [#allocation5], %s383_s8 }
  0x39   : > { %385 = vmatpush1.msk.msra.mxu0 %vm210_vm0, %v198_v3  ;;  %v193_v9 = vld [vmem:[%s166_s17 + $0x8] sm:$0xff]  ;;  %203 = vperm.xlu0 %445, %v200_v8   ;;  %v192_v10 = vld [vmem:[%s166_s17] sm:$0xff]  ;;  %s305_s22 = sshll.u32 %s188_s20, 4  ;;  %s303_s28 = scalar_lea.hbm %s719_s3, %s393_s19  ;;  %s306_s22 = int_to_ptr.vmem [resolvable:$true] %s305_s22 }
  0x3a   : > { %243 = vmatprep.subr.mxu0 %v197_v4  ;;  %v191_v11 = vld [vmem:[%s716_s0] sm:$0x3f]  ;;  %s291_s29 = scalar_lea.sflag [#allocation4], %s666_s9  ;;  %s474_s30 = scalar_lea.vmem %s306_s22, 256 }
  0x3b   : > { %244 = vmatpush1.msra.mxu0 %v196_v5  ;;  %p475_p11 = scmp.ne.s32.totalorder %s306_s22, %s474_s30  ;;  %p729_p12 = scmp.ne.s32.totalorder %s724_s24, 0 }
  0x3c   : > { %245 = vmatprep.subr.mxu0 %v195_v6  ;;  %s546_s5 = smov [#allocation5]  }
  0x3d   : > { %246 = vmatpush1.msra.mxu0 %v194_v7  ;;  %p476_p13 = pnand %p475_p11, %p729_p12  ;;  %s478_s16 = sshll.u32 %s546_s5, 4  ;;  %s479_s16 = int_to_ptr.vmem [resolvable:$false] %s478_s16 }
  0x3e   : > { %247 = vmatprep.subr.mxu0 %v193_v9  ;;  %s480_s10 = scalar_lea.vmem %s479_s16, 512  ;;  %p481_p5 = scmp.lt.s32.totalorder %s306_s22, %s479_s16 }
  0x3f   : > { %248 = vmatpush1.msra.mxu0 %v192_v10  ;;  %p477_p4 = pneg %p476_p13  ;;  %p482_p7 = scmp.lt.s32.totalorder %s480_s10, %s474_s30 }
  0x40   : > { %386 = vmatmul.mubr.msk.f32.vlgmr.msra.gmra.mxu0 %vm206_vm1, %v191_v11 }
  0x41   : > { %p483_p8 = por %p482_p7, %p481_p5 }
  0x43   : > { %p484_p10 = pnand %p483_p8, %p477_p4 }
  0xb4   : > { %v204_v12 = vpop.permute.xlu0 %203 }
 0x100   : > { %v283_v13 = vpop.f32.mrf.mxu0 }
 0x101   : > { %v284_v14 = vadd.f32 %v283_v13, %v204_v12 }
 0x102   : > { %v285_v15 = vpop.f32.mrf.mxu0 }
 0x103   : > { %288 = vst [vmem:[%s188_s20] sm:$0x3f] %v284_v14  ;;  %v286_v16 = vadd.f32 %v285_v15, %v204_v12 }
 0x105   : > { %289 = vst [vmem:[%s188_s20 + $0x8] sm:$0x3f] %v286_v16 }
 0x106   : > { %487 = shalt.err (!%p484_p10)
}
 0x107   : > { %s488_s11 = scalar_lea.hbm %s303_s28, 256  ;;  %s492_s4 = scalar_lea.hbm %s719_s3, 512 }
 0x108   : > { %p489_p1 = scmp.ne.s32.totalorder %s303_s28, %s488_s11  ;;  %p493_p0 = scmp.lt.s32.totalorder %s303_s28, %s719_s3 }
 0x109   : > { %p494_p2 = scmp.lt.s32.totalorder %s492_s4, %s488_s11 }
 0x10a   : > { %p490_p3 = pnand %p489_p1, %p729_p12 }
 0x10b   : > { %p495_p6 = por %p494_p2, %p493_p0 }
 0x10c   : > { %p491_p9 = pneg %p490_p3 }
 0x10e   : > { %p496_p11 = pnand %p495_p6, %p491_p9 }
 0x110   : > { %499 = shalt.err (!%p496_p11)
}
 0x111   : > { %396 = dma.vmem_to_hbm [thread:$0]  (%p729_p12), %s306_s22, 256, %s303_s28, %s291_s29  }
 0x112 PF: > { %s317_s7 = sand.u32 1, %s526_s12   ;;  %p730_p13 = scmp.ne.s32.totalorder %s725_s25, 0 }
 0x113   : > { %p731_p4 = scmp.ge.s32.totalorder %s538_s15, 2  ;;  %s318_s8 = scalar_lea.sflag [#allocation4], %s317_s7 }
 0x115   : > { %p403_p5 = pnand %p731_p4, %p730_p13 }
 0x117   : > { %p404_p7 = pneg %p403_p5 }
 0x119   : > { %521 = dma.done.wait (%p404_p7), %s318_s8, 256  }
 0x11a   : > { %523 = vsyncadd (%p404_p7), %s318_s8, 4294967040  ;;  %p16_p8 = scmp.ge.s32.totalorder %s592_s18, 4   ;;  %s732_s12 = smov %s530_s13 }
 0x11b   : > { %s733_s13 = smov %s534_s14  ;;  %s734_s14 = smov %s604_s21 }
 0x11c   : > { %s735_s15 = smov %s592_s18  ;;  %18 = sbr.rel (!%p16_p8) target bundleno = 5 (0x5), region = 77 }
 0x121   :  { %323 = vsyncpa [#allocation3], 1 }
 0x122   :  { %325 = vsyncpa [#allocation3 + $0x1], 1 }
 0x123   :  { %326 = vsyncpa [#allocation4], 1 }
 0x124   :  { %328 = vsyncpa [#allocation4 + $0x1], 1 }

</bundles_post_ra>
